<compile_context>
chip_gen: v7x
topology: tpu7x:2x2x1
jax: 0.10.0
libtpu: 0.0.40
codegen_flags: <defaults>
</compile_context>

<pallas_src>
import jax
import jax.numpy as jnp
from jax.experimental import pallas as pl
from jax.experimental.pallas import tpu as pltpu


def _super_min_kernel(w_ref, x_ref, o_ref):
    """w_ref: SMEM (3,) f32; x_ref: VMEM (3, TB) f32; o_ref: VMEM (1, TB) f32."""
    x = x_ref[...]                                   # (3, TB) — one vreg tile
    out = (w_ref[0] * x[0:1, :]                      # VPU scalar-broadcast FMAs
           + w_ref[1] * x[1:2, :]
           + w_ref[2] * x[2:3, :])                   # (1, TB), f32
    o_ref[...] = out.astype(o_ref.dtype)


def super_min_forward(x, w_eff, *, max_tb=1024):
    """x: (B, 3) f32; w_eff: (3,) f32 fused weight -> (B, 1) f32."""
    B, F = x.shape
    assert F == 3 and w_eff.shape == (3,)

    # Lane-dense tiling of the batch: TB is a multiple of 128, up to max_tb.
    b_128 = pl.cdiv(B, 128) * 128
    tb = min(max_tb, b_128)
    b_pad = pl.cdiv(b_128, tb) * tb
    grid = b_pad // tb

    # Feature-major, lane-padded input: (3, B_pad). Pad lanes with zeros.
    x_t = jnp.pad(x.T, ((0, 0), (0, b_pad - B)))

    out = pl.pallas_call(
        _super_min_kernel,
        out_shape=jax.ShapeDtypeStruct((1, b_pad), x.dtype),
        grid=(grid,),
        in_specs=[
            pl.BlockSpec(memory_space=pltpu.MemorySpace.SMEM),   # w_eff scalars
            pl.BlockSpec((3, tb), lambda i: (0, i)),             # x tile
        ],
        out_specs=pl.BlockSpec((1, tb), lambda i: (0, i)),       # lane-dense out
        compiler_params=pltpu.CompilerParams(
            dimension_semantics=("parallel",)),
    )(w_eff, x_t)

    # Back to the module's (B, 1) output layout.
    return out[0, :B].reshape(B, 1)


def make_weights():
    """Exact weights from SuperMinModel.__init__ plus the fused vector."""
    w1 = jnp.array([[2.0, 2.0, 2.0],
                    [1.0, 1.0, 1.0]], dtype=jnp.float32)   # (out=2, in=3)
    w2 = jnp.array([[1.0, -1.0]], dtype=jnp.float32)        # (out=1, in=2)
    # out = x @ W1^T @ W2^T = x @ (W2 @ W1)^T  -> fused weight vector (3,)
    w_eff = (w2 @ w1).reshape(3)
    return w1, w2, w_eff


if __name__ == "__main__":
    key = jax.random.PRNGKey(0)
    B = 8
    x = jax.random.normal(key, (B, 3), jnp.float32)

    w1, w2, w_eff = make_weights()

    out = super_min_forward(x, w_eff)
    out = jax.block_until_ready(out)

    # Reference: exact PyTorch math (two unfused linears).
    ref = (x @ w1.T) @ w2.T
    assert out.shape == (B, 1)
    assert jnp.allclose(out, ref, atol=1e-5, rtol=1e-5)
    # The module's weights encode "sum of inputs" — sanity check that too.
    assert jnp.allclose(out, x.sum(axis=-1, keepdims=True), atol=1e-5, rtol=1e-5)

    # Exercise lane padding on a non-multiple-of-128 batch as well.
    x2 = jax.random.normal(jax.random.PRNGKey(1), (133, 3), jnp.float32)
    out2 = jax.block_until_ready(super_min_forward(x2, w_eff))
    ref2 = (x2 @ w1.T) @ w2.T
    assert jnp.allclose(out2, ref2, atol=1e-5, rtol=1e-5)

    print("KERNEL_OK")
</pallas_src>

<mosaic_0001>
module attributes {stable_mosaic.version = 11 : i64} {
  func.func @_super_min_kernel(%arg0: i32, %arg1: memref<3xf32, #tpu.memory_space<smem>>, %arg2: memref<3x128xf32, #tpu.memory_space<vmem>>, %arg3: memref<1x128xf32, #tpu.memory_space<vmem>>) attributes {dimension_semantics = [#tpu.dimension_semantics<parallel>], iteration_bounds = array<i64: 1>, scalar_prefetch = 0 : i64, scratch_operands = 0 : i64, tpu.core_type = #tpu.core_type<tc>, window_params = [{transform_indices = @transform_0, window_bounds = array<i64: 3>}, {transform_indices = @transform_1, window_bounds = array<i64: 3, 128>}, {transform_indices = @transform_2, window_bounds = array<i64: 1, 128>}]} {
    %c0 = arith.constant 0 : index
    %c0_0 = arith.constant 0 : index
    %0 = vector.load %arg2[%c0, %c0_0] : memref<3x128xf32, #tpu.memory_space<vmem>>, vector<3x128xf32>
    %c0_1 = arith.constant 0 : index
    %1 = memref.load %arg1[%c0_1] : memref<3xf32, #tpu.memory_space<smem>>
    %2 = vector.extract_strided_slice %0 {offsets = [0, 0], sizes = [1, 128], strides = [1, 1]} : vector<3x128xf32> to vector<1x128xf32>
    %3 = vector.broadcast %1 : f32 to vector<1x128xf32>
    %4 = arith.mulf %3, %2 : vector<1x128xf32>
    %c1 = arith.constant 1 : index
    %5 = memref.load %arg1[%c1] : memref<3xf32, #tpu.memory_space<smem>>
    %6 = vector.extract_strided_slice %0 {offsets = [1, 0], sizes = [1, 128], strides = [1, 1]} : vector<3x128xf32> to vector<1x128xf32>
    %7 = vector.broadcast %5 : f32 to vector<1x128xf32>
    %8 = arith.mulf %7, %6 : vector<1x128xf32>
    %9 = arith.addf %4, %8 : vector<1x128xf32>
    %c2 = arith.constant 2 : index
    %10 = memref.load %arg1[%c2] : memref<3xf32, #tpu.memory_space<smem>>
    %11 = vector.extract_strided_slice %0 {offsets = [2, 0], sizes = [1, 128], strides = [1, 1]} : vector<3x128xf32> to vector<1x128xf32>
    %12 = vector.broadcast %10 : f32 to vector<1x128xf32>
    %13 = arith.mulf %12, %11 : vector<1x128xf32>
    %14 = arith.addf %9, %13 : vector<1x128xf32>
    %c0_2 = arith.constant 0 : index
    %c0_3 = arith.constant 0 : index
    %15 = vector.load %arg3[%c0_2, %c0_3] : memref<1x128xf32, #tpu.memory_space<vmem>>, vector<1x128xf32>
    tpu.vector_store %arg3[%c0_2, %c0_3], %14 {strides = array<i32>} : memref<1x128xf32, #tpu.memory_space<vmem>>, vector<1x128xf32>,
    return
  }
  func.func @transform_0(%arg0: i32) -> i32 {
    %c0_i32 = arith.constant 0 : i32
    %c0_i32_0 = arith.constant 0 : i32
    return %c0_i32 : i32
  }
  func.func @transform_1(%arg0: i32) -> (i32, i32) {
    %c0_i32 = arith.constant 0 : i32
    %c0_i32_0 = arith.constant 0 : i32
    return %c0_i32, %arg0 : i32, i32
  }
  func.func @transform_2(%arg0: i32) -> (i32, i32) {
    %c0_i32 = arith.constant 0 : i32
    %c0_i32_0 = arith.constant 0 : i32
    return %c0_i32, %arg0 : i32, i32
  }
}

</mosaic_0001>

<bundles_post_ra>
// kernel: tpu_custom_call.1
= control target key start
LH: loop header
LB: loop body
LE: loop exit
PB: predicated region body
PF: predicated region fallthrough
CT: control target
= control target key end

     0   :  { %7 = vsyncpa [#allocation5], 0  ;;  %s189_s0 = inlined_call_operand.hbm [shape: f32[3], index: 0, kind: input, shape index: {}]   ;;  %s190_s1 = inlined_call_operand.hbm [shape: f32[3,128], index: 1, kind: input, shape index: {}]   ;;  %s191_s2 = inlined_call_operand.hbm [shape: f32[1,128], index: 2, kind: output, shape index: {}]  }
   0x1   :  { %8 = vsyncpa [#allocation3], 0 }
   0x2   :  { %9 = vsyncpa [#allocation4], 0  ;;  %s75_s11 = scalar_lea.hbm %s189_s0, 16 }
   0x3   :  { %p76_p0 = scmp.ne.s32.totalorder %s189_s0, %s75_s11  ;;  %p79_p1 = scmp.lt.u32.totalorder %s75_s11, %s189_s0 }
   0x5   :  { %p81_p2 = pnand %p79_p1, %p76_p0 }
   0x7   :  { %84 = shalt.err (!%p81_p2)
}
   0x8   :  { %s135_s16 = smov [#allocation2]   ;;  %s136_s19 = smov [#allocation6]  }
   0x9   :  { %17 = dma.hbm_to_smem %s189_s0, 16, %s135_s16, [#allocation5]  }
   0xa   :  { %s24_s20 = sshll.u32 %s136_s19, 4  ;;  %s85_s23 = scalar_lea.hbm %s190_s1, 64  ;;  %s25_s20 = int_to_ptr.vmem [resolvable:$true] %s24_s20 }
   0xb   :  { %p86_p3 = scmp.ne.s32.totalorder %s190_s1, %s85_s23  ;;  %p89_p4 = scmp.lt.u32.totalorder %s85_s23, %s190_s1 }
   0xd   :  { %p91_p5 = pnand %p89_p4, %p86_p3 }
   0xf   :  { %94 = shalt.err (!%p91_p5)
}
  0x10   :  { %s95_s28 = scalar_lea.vmem %s25_s20, 64  ;;  %p100_p7 = scmp.lt.s32.totalorder %s25_s20, %s25_s20 }
  0x11   :  { %p96_p6 = scmp.ne.s32.totalorder %s25_s20, %s95_s28  ;;  %p101_p8 = scmp.lt.s32.totalorder %s95_s28, %s95_s28 }
  0x13   :  { %p102_p9 = por %p101_p8, %p100_p7 }
  0x15   :  { %p103_p10 = pnand %p102_p9, %p96_p6 }
  0x17   :  { %106 = shalt.err (!%p103_p10)
}
  0x18   :  { %27 = dma.hbm_to_vmem [thread:$0]  %s190_s1, 64, %s25_s20, [#allocation3]  }
  0x19   :  { %129 = dma.done.wait [#allocation5], 16  }
  0x1a   :  { %130 = vsyncadd [#allocation5], 4294967280 }
  0x1b   :  { %131 = dma.done.wait [#allocation3], 64  }
  0x1c   :  { %132 = vsyncadd [#allocation3], 4294967232 }
  0x1d   :  { %34 = sfence }
  0x1e   :  { %s36_s30 = sld [smem:[#allocation2]]  ;;  %s70_s3 = sld [smem:[#allocation2 + $0x1]]  ;;  %v35_v0 = vld [vmem:[#allocation6] sm:$0x7] }
  0x1f   :  { %s71_s4 = sld [smem:[#allocation2 + $0x2]]  ;;  %s137_s5 = smov [#allocation7]  }
  0x20   :  { %s60_s6 = sshll.u32 %s137_s5, 4  ;;  %s61_s6 = int_to_ptr.vmem [resolvable:$true] %s60_s6 }
  0x21   :  { %s107_s1 = scalar_lea.vmem %s61_s6, 16  ;;  %s111_s7 = scalar_lea.vmem %s61_s6, 32 }
  0x22   :  { %p108_p11 = scmp.ne.s32.totalorder %s61_s6, %s107_s1  ;;  %p112_p12 = scmp.lt.s32.totalorder %s61_s6, %s61_s6 }
  0x23   :  { %p113_p13 = scmp.lt.s32.totalorder %s111_s7, %s107_s1 }
  0x24   :  { %v37_v1 = vstv %s36_s30  ;;  %v40_v2 = vstv %s70_s3 }
  0x25   :  { %v38_v3 = vmul.f32 %v37_v1, %v35_v0  ;;  %v41_v4 = vmul.f32 %v40_v2, %v35_v0  ;;  %v47_v5 = vstv %s71_s4  ;;  %p114_p0 = por %p113_p13, %p112_p12 }
  0x26   :  { %v48_v6 = vmul.f32 %v47_v5, %v35_v0 }
  0x27   :  { %v43_v7 = vrot.slane %v41_v4, 1  ;;  %p115_p1 = pnand %p114_p0, %p108_p11 }
  0x28   :  { %v50_v8 = vrot.slane %v48_v6, 2 }
  0x29   :  { %v45_v9 = vadd.f32 %v43_v7, %v38_v3 }
  0x2b   :  { %v52_v10 = vadd.f32 %v50_v8, %v45_v9 }
  0x2d   :  { %53 = vst [vmem:[#allocation7] sm:$0x1] %v52_v10 }
  0x2e   :  { %118 = shalt.err (!%p115_p1)
}
  0x2f   :  { %s119_s10 = scalar_lea.hbm %s191_s2, 16 }
  0x30   :  { %p120_p2 = scmp.ne.s32.totalorder %s191_s2, %s119_s10  ;;  %p123_p3 = scmp.lt.u32.totalorder %s119_s10, %s191_s2 }
  0x32   :  { %p125_p4 = pnand %p123_p3, %p120_p2 }
  0x34   :  { %128 = shalt.err (!%p125_p4)
}
  0x35   :  { %63 = dma.vmem_to_hbm [thread:$0]  %s61_s6, 16, %s191_s2, [#allocation4]  }
  0x36   :  { %133 = dma.done.wait [#allocation4], 16  }
  0x37   :  { %134 = vsyncadd [#allocation4], 4294967280 }
  0x38   :  { %67 = vsyncpa [#allocation3], 1 }
  0x39   :  { %68 = vsyncpa [#allocation4], 1 }
  0x3a   :  { %69 = vsyncpa [#allocation5], 1 }

</bundles_post_ra>
